<compile_context>
chip_gen: v7x
topology: tpu7x:2x2x1
jax: 0.10.0
libtpu: 0.0.40
codegen_flags: <defaults>
</compile_context>

<pallas_src>
from functools import partial

import jax
import jax.numpy as jnp
from jax.experimental import pallas as pl
from jax.experimental.pallas import tpu as pltpu


# ----------------------------- Pallas kernels ------------------------------

def _linear_kernel(x_ref, w_ref, b_ref, o_ref):
    # y = x @ w + b   (bf16 MXU inputs, f32 accumulate, bias add in f32)
    acc = jnp.dot(x_ref[...], w_ref[...], preferred_element_type=jnp.float32)
    o_ref[...] = (acc + b_ref[...]).astype(o_ref.dtype)


def _fused_mlp_kernel(x_ref, w1_ref, b1_ref, w2_ref, b2_ref, o_ref):
    # Fused: h = x @ w1 + b1 ; y = h @ w2 + b2.
    # The (tm, N1) intermediate h stays in vregs/VMEM — no HBM writeback/refetch.
    h = jnp.dot(x_ref[...], w1_ref[...], preferred_element_type=jnp.float32)
    h = h + b1_ref[...]
    h = h.astype(w2_ref.dtype)                      # back to bf16 for 2nd MXU pass
    y = jnp.dot(h, w2_ref[...], preferred_element_type=jnp.float32)
    o_ref[...] = (y + b2_ref[...]).astype(o_ref.dtype)


def _pick_tm(M):
    # Target large M tiles (>=256 MXU rows) once the workload is realistic;
    # for tiny M just round up to the 8-row sublane granule.
    if M >= 256:
        return 256
    return max(8, ((M + 7) // 8) * 8)


_COMPILER_PARAMS = pltpu.CompilerParams(
    # M axis is independent -> "parallel" shards the grid across v7x's 2 TCs;
    # harmless (single TC) on v5e/v6e.
    dimension_semantics=("parallel",),
    # Explicit scoped-VMEM budget, safe on all generations (v7x physical = 64 MiB).
    vmem_limit_bytes=32 * 1024 * 1024,
)


def linear_pallas(x, w, b, out_dtype=jnp.float32):
    """y = x @ w + b   with x:(M,K) bf16, w:(K,N) bf16, b:(1,N) f32."""
    M, K = x.shape
    Kw, N = w.shape
    assert K == Kw and b.shape == (1, N)
    tm = _pick_tm(M)
    M_pad = pl.cdiv(M, tm) * tm
    if M_pad != M:
        x = jnp.pad(x, ((0, M_pad - M), (0, 0)))
    y = pl.pallas_call(
        _linear_kernel,
        out_shape=jax.ShapeDtypeStruct((M_pad, N), out_dtype),
        grid=(M_pad // tm,),
        in_specs=[
            pl.BlockSpec((tm, K), lambda i: (i, 0)),
            pl.BlockSpec((K, N), lambda i: (0, 0)),   # weights VMEM-resident
            pl.BlockSpec((1, N), lambda i: (0, 0)),   # bias VMEM-resident
        ],
        out_specs=pl.BlockSpec((tm, N), lambda i: (i, 0)),
        compiler_params=_COMPILER_PARAMS,
    )(x, w, b)
    return y[:M] if M_pad != M else y


def fused_mlp_pallas(x, w1, b1, w2, b2, out_dtype=jnp.float32):
    """y = (x @ w1 + b1) @ w2 + b2 in ONE pallas_call (embed + projection)."""
    M, K = x.shape
    K1, N1 = w1.shape
    N1w, N2 = w2.shape
    assert K == K1 and N1 == N1w and b1.shape == (1, N1) and b2.shape == (1, N2)
    tm = _pick_tm(M)
    M_pad = pl.cdiv(M, tm) * tm
    if M_pad != M:
        x = jnp.pad(x, ((0, M_pad - M), (0, 0)))
    y = pl.pallas_call(
        _fused_mlp_kernel,
        out_shape=jax.ShapeDtypeStruct((M_pad, N2), out_dtype),
        grid=(M_pad // tm,),
        in_specs=[
            pl.BlockSpec((tm, K), lambda i: (i, 0)),
            pl.BlockSpec((K, N1), lambda i: (0, 0)),   # both weight mats pinned
            pl.BlockSpec((1, N1), lambda i: (0, 0)),
            pl.BlockSpec((N1, N2), lambda i: (0, 0)),
            pl.BlockSpec((1, N2), lambda i: (0, 0)),
        ],
        out_specs=pl.BlockSpec((tm, N2), lambda i: (i, 0)),
        compiler_params=_COMPILER_PARAMS,
    )(x, w1, b1, w2, b2)
    return y[:M] if M_pad != M else y


# -------------------- jitted end-to-end encode functions --------------------
# Jitting the whole encode path lets XLA fuse the patchify reshape/transpose
# with the pallas_call's input staging instead of running each layout op as a
# separate eager dispatch.

def _patchify(x, patch):
    # x: (B, C, H, W) -> (B * nP, C*p*p), row-major over (B, Hp, Wp)
    # TODO(synk): a production kernel would DMA directly from the NCHW tensor
    # (Element-indexed BlockSpec) to skip this extra HBM round trip.
    B, C, H, W = x.shape
    p = patch
    x = x.reshape(B, C, H // p, p, W // p, p)
    x = jnp.transpose(x, (0, 2, 4, 1, 3, 5))            # (B, Hp, Wp, C, p, p)
    return x.reshape(B * (H // p) * (W // p), C * p * p)


@partial(jax.jit, static_argnames=("patch",))
def _encode_embed_only(x, w1, b1, *, patch):
    tokens = _patchify(x, patch).astype(w1.dtype)        # bf16 MXU input
    return linear_pallas(tokens, w1, b1)


@partial(jax.jit, static_argnames=("patch",))
def _encode_fused(x, w1, b1, w2, b2, *, patch):
    tokens = _patchify(x, patch).astype(w1.dtype)        # bf16 MXU input
    return fused_mlp_pallas(tokens, w1, b1, w2, b2)


# ----------------------- Synthetic vision encoder --------------------------
# TODO(synk): the real vision_encoder architecture is injected at construction
# time and not defined in the module; this is a deterministic stand-in
# (patch-embed linear + optional projection) whose matmuls run in Pallas.

class SyntheticVisionEncoder:
    def __init__(self, key, in_ch=4, patch=8, embed_dim=128, proj_dim=128,
                 param_dtype=jnp.bfloat16):
        self.patch = patch
        self.in_ch = in_ch
        patch_dim = in_ch * patch * patch
        k1, k2, k3, k4 = jax.random.split(key, 4)
        s1 = 1.0 / jnp.sqrt(patch_dim)
        s2 = 1.0 / jnp.sqrt(embed_dim)
        # Weights in bf16 (MXU-native on v5e/v6e/v7x, half the weight DMA bytes);
        # biases kept f32 and pre-shaped (1, N) once (hoisted broadcast).
        self.w_embed = (jax.random.normal(k1, (patch_dim, embed_dim)) * s1).astype(param_dtype)
        self.b_embed = (jax.random.normal(k2, (1, embed_dim)) * s1).astype(jnp.float32)
        self.w_proj = (jax.random.normal(k3, (embed_dim, proj_dim)) * s2).astype(param_dtype)
        self.b_proj = (jax.random.normal(k4, (1, proj_dim)) * s2).astype(jnp.float32)

    def forward(self, x, skip_projection=False):
        if skip_projection:
            return _encode_embed_only(x, self.w_embed, self.b_embed,
                                      patch=self.patch)
        # Fused embed + projection: one kernel launch, intermediate stays in VMEM.
        return _encode_fused(x, self.w_embed, self.b_embed,
                             self.w_proj, self.b_proj, patch=self.patch)


# ------------------------------ LangClassifier -----------------------------

class LangClassifier:
    def __init__(self, vision_encoder, language_decoder):
        self.vision_encoder = vision_encoder
        self.language_decoder = language_decoder  # unused by the methods below
        # self.sampler = nn.Identity()  -> pure pass-through; no kernel needed
        #   (an identity copy kernel would be a full HBM round trip of z plus a
        #    launch with zero compute).

    def encode_images(self, x, skip_projection=False):
        return self.vision_encoder.forward(x, skip_projection=skip_projection)

    def decode_images(self, z):
        return z  # nn.Identity semantics, zero cost

    def forward(self):
        # Matches the PyTorch module: forward() returns None (no compute).
        return None


# -------------------------------- reference ---------------------------------

def _ref_encode(x, enc, skip_projection):
    # Pure-JAX reference emulating the kernel's bf16-input / f32-accumulate path.
    tokens = _patchify(x, enc.patch).astype(jnp.bfloat16).astype(jnp.float32)
    w1 = enc.w_embed.astype(jnp.float32)
    h = tokens @ w1 + enc.b_embed
    if skip_projection:
        return h
    h = h.astype(jnp.bfloat16).astype(jnp.float32)
    w2 = enc.w_proj.astype(jnp.float32)
    return h @ w2 + enc.b_proj


# ----------------------------------- main -----------------------------------

if __name__ == "__main__":
    key = jax.random.PRNGKey(0)
    k_img, k_enc = jax.random.split(key)

    # Small NCHW image batch consistent with a vision encoder input.
    x = jax.random.normal(k_img, (2, 4, 16, 16), dtype=jnp.float32)

    encoder = SyntheticVisionEncoder(k_enc, in_ch=4, patch=8,
                                     embed_dim=128, proj_dim=128)
    model = LangClassifier(vision_encoder=encoder, language_decoder=None)

    # encode_images: fused Pallas matmul (embed+proj) and single-layer path.
    z = model.encode_images(x, skip_projection=False)
    z_noproj = model.encode_images(x, skip_projection=True)

    # decode_images -> Identity sampler (zero-cost pass-through).
    y = model.decode_images(z)

    # forward() returns None exactly like the PyTorch module.
    assert model.forward() is None

    jax.block_until_ready((z, z_noproj, y))

    # Sanity: shapes, identity semantics, and reference matmul checks.
    assert z.shape == (8, 128) and z_noproj.shape == (8, 128)
    assert y is z

    ref_noproj = _ref_encode(x, encoder, skip_projection=True)
    ref_full = _ref_encode(x, encoder, skip_projection=False)
    assert bool(jnp.allclose(z_noproj, ref_noproj, atol=5e-2, rtol=5e-2))
    assert bool(jnp.allclose(z, ref_full, atol=5e-2, rtol=5e-2))

    print("KERNEL_OK")
</pallas_src>

<mosaic_0001>
module attributes {stable_mosaic.version = 11 : i64} {
  func.func @_fused_mlp_kernel(%arg0: i32, %arg1: memref<8x256xbf16, #tpu.memory_space<vmem>>, %arg2: memref<256x128xbf16, #tpu.memory_space<vmem>>, %arg3: memref<1x128xf32, #tpu.memory_space<vmem>>, %arg4: memref<128x128xbf16, #tpu.memory_space<vmem>>, %arg5: memref<1x128xf32, #tpu.memory_space<vmem>>, %arg6: memref<8x128xf32, #tpu.memory_space<vmem>>) attributes {dimension_semantics = [#tpu.dimension_semantics<parallel>], iteration_bounds = array<i64: 1>, scalar_prefetch = 0 : i64, scratch_operands = 0 : i64, tpu.core_type = #tpu.core_type<tc>, window_params = [{transform_indices = @transform_0, window_bounds = array<i64: 8, 256>}, {pipeline_mode = #tpu.pipeline_mode<synchronous>, transform_indices = @transform_1, window_bounds = array<i64: 256, 128>}, {pipeline_mode = #tpu.pipeline_mode<synchronous>, transform_indices = @transform_2, window_bounds = array<i64: 1, 128>}, {pipeline_mode = #tpu.pipeline_mode<synchronous>, transform_indices = @transform_3, window_bounds = array<i64: 128, 128>}, {pipeline_mode = #tpu.pipeline_mode<synchronous>, transform_indices = @transform_4, window_bounds = array<i64: 1, 128>}, {transform_indices = @transform_5, window_bounds = array<i64: 8, 128>}]} {
    %c0 = arith.constant 0 : index
    %c0_0 = arith.constant 0 : index
    %0 = vector.load %arg1[%c0, %c0_0] : memref<8x256xbf16, #tpu.memory_space<vmem>>, vector<8x256xbf16>
    %c0_1 = arith.constant 0 : index
    %c0_2 = arith.constant 0 : index
    %1 = vector.load %arg2[%c0_1, %c0_2] : memref<256x128xbf16, #tpu.memory_space<vmem>>, vector<256x128xbf16>
    %cst = arith.constant dense<0.000000e+00> : vector<8x128xf32>
    %2 = tpu.matmul %0, %1, %cst {dimension_numbers = #tpu.dot_dimension_numbers<[1], [0], [0], [1], [0, 0, 1, 1], [], []>} : vector<8x256xbf16>, vector<256x128xbf16>, vector<8x128xf32> -> vector<8x128xf32>
    %c0_3 = arith.constant 0 : index
    %c0_4 = arith.constant 0 : index
    %3 = vector.load %arg3[%c0_3, %c0_4] : memref<1x128xf32, #tpu.memory_space<vmem>>, vector<1x128xf32>
    %4 = vector.broadcast %3 : vector<1x128xf32> to vector<8x128xf32>
    %5 = arith.addf %2, %4 : vector<8x128xf32>
    %6 = arith.truncf %5 : vector<8x128xf32> to vector<8x128xbf16>
    %c0_5 = arith.constant 0 : index
    %c0_6 = arith.constant 0 : index
    %7 = vector.load %arg4[%c0_5, %c0_6] : memref<128x128xbf16, #tpu.memory_space<vmem>>, vector<128x128xbf16>
    %cst_7 = arith.constant dense<0.000000e+00> : vector<8x128xf32>
    %8 = tpu.matmul %6, %7, %cst_7 {dimension_numbers = #tpu.dot_dimension_numbers<[1], [0], [0], [1], [0, 0, 1, 1], [], []>} : vector<8x128xbf16>, vector<128x128xbf16>, vector<8x128xf32> -> vector<8x128xf32>
    %c0_8 = arith.constant 0 : index
    %c0_9 = arith.constant 0 : index
    %9 = vector.load %arg5[%c0_8, %c0_9] : memref<1x128xf32, #tpu.memory_space<vmem>>, vector<1x128xf32>
    %10 = vector.broadcast %9 : vector<1x128xf32> to vector<8x128xf32>
    %11 = arith.addf %8, %10 : vector<8x128xf32>
    %c0_10 = arith.constant 0 : index
    %c0_11 = arith.constant 0 : index
    %12 = vector.load %arg6[%c0_10, %c0_11] : memref<8x128xf32, #tpu.memory_space<vmem>>, vector<8x128xf32>
    tpu.vector_store %arg6[%c0_10, %c0_11], %11 {strides = array<i32>} : memref<8x128xf32, #tpu.memory_space<vmem>>, vector<8x128xf32>,
    return
  }
  func.func @transform_0(%arg0: i32) -> (i32, i32) {
    %c0_i32 = arith.constant 0 : i32
    %c0_i32_0 = arith.constant 0 : i32
    return %arg0, %c0_i32 : i32, i32
  }
  func.func @transform_1(%arg0: i32) -> (i32, i32) {
    %c0_i32 = arith.constant 0 : i32
    %c0_i32_0 = arith.constant 0 : i32
    %c0_i32_1 = arith.constant 0 : i32
    return %c0_i32, %c0_i32_0 : i32, i32
  }
  func.func @transform_2(%arg0: i32) -> (i32, i32) {
    %c0_i32 = arith.constant 0 : i32
    %c0_i32_0 = arith.constant 0 : i32
    %c0_i32_1 = arith.constant 0 : i32
    return %c0_i32, %c0_i32_0 : i32, i32
  }
  func.func @transform_3(%arg0: i32) -> (i32, i32) {
    %c0_i32 = arith.constant 0 : i32
    %c0_i32_0 = arith.constant 0 : i32
    %c0_i32_1 = arith.constant 0 : i32
    return %c0_i32, %c0_i32_0 : i32, i32
  }
  func.func @transform_4(%arg0: i32) -> (i32, i32) {
    %c0_i32 = arith.constant 0 : i32
    %c0_i32_0 = arith.constant 0 : i32
    %c0_i32_1 = arith.constant 0 : i32
    return %c0_i32, %c0_i32_0 : i32, i32
  }
  func.func @transform_5(%arg0: i32) -> (i32, i32) {
    %c0_i32 = arith.constant 0 : i32
    %c0_i32_0 = arith.constant 0 : i32
    return %arg0, %c0_i32 : i32, i32
  }
}

</mosaic_0001>

<bundles_post_ra>
// kernel: _encode_fused.1
= control target key start
LH: loop header
LB: loop body
LE: loop exit
PB: predicated region body
PF: predicated region fallthrough
CT: control target
= control target key end

     0   :  { %v464_v2 = vmov 0.0   ;;  %s590_s0 = inlined_call_operand.vmem [shape: bf16[8,256], index: 0, kind: input, shape index: {}]   ;;  %s591_s1 = inlined_call_operand.vmem [shape: bf16[256,128], index: 1, kind: input, shape index: {}]   ;;  %s592_s2 = inlined_call_operand.vmem [shape: f32[1,128], index: 2, kind: input, shape index: {}]   ;;  %s593_s3 = inlined_call_operand.vmem [shape: bf16[128,128], index: 3, kind: input, shape index: {}]   ;;  %s594_s4 = inlined_call_operand.vmem [shape: f32[1,128], index: 4, kind: input, shape index: {}]   ;;  %s595_s5 = inlined_call_operand.hbm [shape: f32[8,128], index: 5, kind: output, shape index: {}]  }
   0x1   :  { %v414_v0 = vld [vmem:[%s591_s1 + $0x40] sm:$0xff]   ;;  %391 = vmatprep.subr.bf16.mxu1 %v464_v2  ;;  %v416_v3 = vld [vmem:[%s591_s1 + $0x48] sm:$0xff]   ;;  %v418_v5 = vld [vmem:[%s591_s1 + $0x50] sm:$0xff]  }
   0x2   :  { %v415_v1 = vld [vmem:[%s591_s1] sm:$0xff]   ;;  %360 = vmatprep.subr.bf16.mxu0 %v414_v0  ;;  %v417_v4 = vld [vmem:[%s591_s1 + $0x8] sm:$0xff]   ;;  %v419_v6 = vld [vmem:[%s591_s1 + $0x10] sm:$0xff]  }
   0x3   :  { %361 = vmatpush3.bf16.msra.mxu0 %v415_v1  ;;  %v420_v7 = vld [vmem:[%s591_s1 + $0x58] sm:$0xff]   ;;  %v422_v9 = vld [vmem:[%s591_s1 + $0x60] sm:$0xff]   ;;  %v424_v11 = vld [vmem:[%s591_s1 + $0x68] sm:$0xff]  }
   0x4   :  { %362 = vmatprep.subr.bf16.mxu0 %v416_v3  ;;  %v421_v8 = vld [vmem:[%s591_s1 + $0x18] sm:$0xff]   ;;  %v423_v10 = vld [vmem:[%s591_s1 + $0x20] sm:$0xff]   ;;  %v425_v15 = vld [vmem:[%s591_s1 + $0x28] sm:$0xff]  }
   0x5   :  { %v22_v12 = vld [vmem:[%s590_s0] sm:$0xff]  ;;  %v426_v16 = vld [vmem:[%s591_s1 + $0x70] sm:$0xff]   ;;  %v433_v17 = vld [vmem:[%s593_s3 + $0x8] sm:$0xff]  }
   0x6   :  { %v334_v13 = vcombine.high %v22_v12, %v22_v12  ;;  %v432_v14 = vld [vmem:[%s593_s3] sm:$0xff]   ;;  %v427_v18 = vld [vmem:[%s591_s1 + $0x30] sm:$0xff]  }
   0x7   :  { %363 = vmatpush3.bf16.msra.mxu0 %v417_v4  ;;  %392 = vmatpush3.bf16.msra.mxu1 %v432_v14 }
   0x8   :  { %364 = vmatprep.subr.bf16.mxu0 %v418_v5  ;;  %197 = vmatprep.mubr.bf16.mxu0 %v334_v13 }
   0x9   :  { %393 = vmatprep.subr.bf16.mxu1 %v464_v2 }
   0xb   :  { %365 = vmatpush3.bf16.msra.mxu0 %v419_v6 }
   0xc   :  { %366 = vmatprep.subr.bf16.mxu0 %v420_v7 }
   0xf   :  { %367 = vmatpush3.bf16.msra.mxu0 %v421_v8 }
  0x10   :  { %368 = vmatprep.subr.bf16.mxu0 %v422_v9 }
  0x13   :  { %369 = vmatpush3.bf16.msra.mxu0 %v423_v10 }
  0x14   :  { %370 = vmatprep.subr.bf16.mxu0 %v424_v11 }
  0x17   :  { %371 = vmatpush3.bf16.msra.mxu0 %v425_v15 }
  0x18   :  { %10 = vsyncpa [#allocation3], 0  ;;  %372 = vmatprep.subr.bf16.mxu0 %v426_v16  ;;  %v428_v19 = vld [vmem:[%s591_s1 + $0x78] sm:$0xff]   ;;  %394 = vmatpush3.bf16.msra.mxu1 %v433_v17  ;;  %v434_v20 = vld [vmem:[%s593_s3 + $0x10] sm:$0xff]   ;;  %v333_v23 = vcombine.low %v22_v12, %v22_v12  ;;  %vm465_vm0 = vmmov 0  }
  0x19   :  { %395 = vmatprep.subr.bf16.mxu1 %v464_v2  ;;  %v429_v21 = vld [vmem:[%s591_s1 + $0x38] sm:$0xff]   ;;  %v436_v24 = vld [vmem:[%s593_s3 + $0x20] sm:$0xff]   ;;  %v437_v25 = vld [vmem:[%s593_s3 + $0x28] sm:$0xff]   ;;  %407 = vmatprep.mubr.msk.bf16.mxu1 %vm465_vm0, %v464_v2 }
  0x1a   :  { %v435_v22 = vld [vmem:[%s593_s3 + $0x18] sm:$0xff]   ;;  %v438_v26 = vld [vmem:[%s593_s3 + $0x30] sm:$0xff]   ;;  %v332_v29 = vld [vmem:[%s592_s2] ss:$0 sm:$0xff] }
  0x1b   :  { %373 = vmatpush3.bf16.msra.mxu0 %v427_v18  ;;  %v439_v27 = vld [vmem:[%s593_s3 + $0x38] sm:$0xff]   ;;  %v351_v36 = vld [vmem:[%s594_s4] ss:$0 sm:$0xff]  ;;  %s466_s3 = smov [#allocation2]  }
  0x1c   :  { %374 = vmatprep.subr.bf16.mxu0 %v428_v19  ;;  %396 = vmatpush3.bf16.msra.mxu1 %v434_v20  ;;  %s324_s20 = sshll.u32 %s466_s3, 4  ;;  %s325_s20 = int_to_ptr.vmem [resolvable:$true] %s324_s20 }
  0x1d   :  { %397 = vmatprep.subr.bf16.mxu1 %v464_v2  ;;  %s440_s2 = scalar_lea.vmem %s325_s20, 128  ;;  %p445_p1 = scmp.lt.s32.totalorder %s325_s20, %s325_s20 }
  0x1e   :  { %p441_p0 = scmp.ne.s32.totalorder %s325_s20, %s440_s2  ;;  %p446_p2 = scmp.lt.s32.totalorder %s440_s2, %s440_s2 }
  0x1f   :  { %375 = vmatpush3.bf16.msra.mxu0 %v429_v21 }
  0x20   :  { %398 = vmatpush3.bf16.msra.mxu1 %v435_v22  ;;  %p447_p3 = por %p446_p2, %p445_p1 }
  0x21   :  { %399 = vmatprep.subr.bf16.mxu1 %v464_v2 }
  0x22   :  { %198 = vmatmul.mubr.bf16.vlgmr.msra.gmra.mrb[0].mxu0 %v333_v23  ;;  %p448_p4 = pnand %p447_p3, %p441_p0 }
  0x24   :  { %400 = vmatpush3.bf16.msra.mxu1 %v436_v24 }
  0x25   :  { %401 = vmatprep.subr.bf16.mxu1 %v464_v2 }
  0x28   :  { %402 = vmatpush3.bf16.msra.mxu1 %v437_v25 }
  0x29   :  { %403 = vmatprep.subr.bf16.mxu1 %v464_v2 }
  0x2c   :  { %404 = vmatpush3.bf16.msra.mxu1 %v438_v26 }
  0x2d   :  { %405 = vmatprep.subr.bf16.mxu1 %v464_v2 }
  0x30   :  { %406 = vmatpush3.bf16.msra.mxu1 %v439_v27 }
  0xf5   :  { %v376_v28 = vpop.f32.mrb[0].mxu0 }
  0xf6   :  { %v377_v30 = vpop.f32.mrb[1].mxu0 }
  0xf7   :  { %v378_v31 = vadd.f32 %v377_v30, %v376_v28  ;;  %v379_v32 = vpop.f32.mrb[2].mxu0 }
  0xf8   :  { %v380_v33 = vpop.f32.mrb[3].mxu0 }
  0xf9   :  { %v200_v34 = vadd.f32 %v378_v31, %v332_v29 }
  0xfb   :  { %v205_v35 = vpack.c.bf16 %v200_v34, %v200_v34 }
  0xfd   :  { %408 = vmatmul.mubr.bf16.vlgmr.msra.gmra.mrb[0].mxu1 %v205_v35 }
 0x1d0   :  { %v311_v37 = vpop.f32.mrb[0].mxu1 }
 0x1d1   :  { %v312_v38 = vadd.f32 %v351_v36, %v311_v37  ;;  %v409_v39 = vpop.f32.mrb[1].mxu1 }
 0x1d2   :  { %v314_v40 = vpop.f32.mrb[2].mxu1 }
 0x1d3   :  { %317 = vst [vmem:[#allocation2] sm:$0xff] %v312_v38  ;;  %v410_v41 = vpop.f32.mrb[3].mxu1 }
 0x1d4   :  { %451 = shalt.err (!%p448_p4)
}
 0x1d5   :  { %s452_s4 = scalar_lea.hbm %s595_s5, 128 }
 0x1d6   :  { %p453_p5 = scmp.ne.s32.totalorder %s595_s5, %s452_s4  ;;  %p456_p6 = scmp.lt.u32.totalorder %s452_s4, %s595_s5 }
 0x1d8   :  { %p458_p7 = pnand %p456_p6, %p453_p5 }
 0x1da   :  { %461 = shalt.err (!%p458_p7)
}
 0x1db   :  { %327 = dma.vmem_to_hbm [thread:$0]  %s325_s20, 128, %s595_s5, [#allocation3]  }
 0x1dc   :  { %462 = dma.done.wait [#allocation3], 128  }
 0x1dd   :  { %463 = vsyncadd [#allocation3], 4294967168 }
 0x1de   :  { %331 = vsyncpa [#allocation3], 1 }

</bundles_post_ra>
